<compile_context>
chip_gen: v7x
topology: tpu7x:2x2x1
jax: 0.10.0
libtpu: 0.0.40
codegen_flags: <defaults>
</compile_context>

<pallas_src>
import functools

import jax
import jax.numpy as jnp
from jax import lax
from jax.experimental import pallas as pl
from jax.experimental.pallas import tpu as pltpu


def _round_up(x, m):
    return ((x + m - 1) // m) * m


def temporal_block_kernel(x_ref, w1_ref, b1_ref, w2_ref, b2_ref, *rest,
                          kernel_size, dilation, out_len, has_downsample):
    """Fused TemporalBlock forward for one (Bt, C, L)-block of the batch.

    x_ref : (Bt, C_in, Lin)    causally pre-padded input (wrapper pads `pad` zeros left)
    w1_ref: (C_out, K*C_in)    conv1 effective (weight-normed) weight, taps flattened, bf16
    b1_ref: (C_out, 1)         conv1 bias, f32
    w2_ref: (C_out, K*C_out)   conv2 effective weight, bf16
    b2_ref: (C_out, 1)         conv2 bias, f32
    wd_ref: (C_out, C_in)      optional 1x1 downsample weight, bf16
    bd_ref: (C_out, 1)         optional downsample bias, f32
    out_ref: (Bt, C_out, Lp)   f32 output, Lp is a multiple of 128
    h1_scr : (C_out, pad+Lp)   VMEM scratch staging conv1's causally-padded output (bf16)
    """
    if has_downsample:
        wd_ref, bd_ref, out_ref, h1_scr = rest
    else:
        out_ref, h1_scr = rest

    K, d, Lp = kernel_size, dilation, out_len
    pad = (K - 1) * d
    Bt = x_ref.shape[0]

    # Weights/biases loaded once per grid step (hoisted out of the batch-tile loop).
    w1 = w1_ref[...]
    b1 = b1_ref[...]
    w2 = w2_ref[...]
    b2 = b2_ref[...]
    if has_downsample:
        wd = wd_ref[...]
        bd = bd_ref[...]

    # The left `pad` lanes of the h1 scratch are the causal zero-padding for conv2.
    if pad > 0:
        h1_scr[:, :pad] = jnp.zeros((h1_scr.shape[0], pad), h1_scr.dtype)

    for bt in range(Bt):  # small static unroll (Bt = 1..4)
        # ---- conv1 (dilated, causal) as ONE MXU matmul via tap stacking ----------
        taps1 = [x_ref[bt, :, k * d:k * d + Lp].astype(jnp.bfloat16)
                 for k in range(K)]
        im2col1 = jnp.concatenate(taps1, axis=0) if K > 1 else taps1[0]
        acc1 = jnp.dot(w1, im2col1, preferred_element_type=jnp.float32)
        # chomp1 is implicit (causal left pad); relu1; dropout1 = identity (eval mode)
        h1_scr[:, pad:] = jnp.maximum(acc1 + b1, 0.0).astype(h1_scr.dtype)

        # ---- conv2 ----------------------------------------------------------------
        taps2 = [h1_scr[:, k * d:k * d + Lp] for k in range(K)]
        im2col2 = jnp.concatenate(taps2, axis=0) if K > 1 else taps2[0]
        acc2 = jnp.dot(w2, im2col2, preferred_element_type=jnp.float32)
        h2 = jnp.maximum(acc2 + b2, 0.0)       # relu2; dropout2 = identity (eval mode)

        # ---- residual (1x1 conv or identity) + final ReLU -------------------------
        if has_downsample:
            xres = x_ref[bt, :, pad:pad + Lp].astype(jnp.bfloat16)
            res = jnp.dot(wd, xres, preferred_element_type=jnp.float32) + bd
        else:
            res = x_ref[bt, :, pad:pad + Lp].astype(jnp.float32)
        out_ref[bt] = jnp.maximum(h2 + res, 0.0)


def weight_norm_effective(v, g):
    """PyTorch weight_norm (dim=0): w = g * v / ||v|| with per-out-channel norm."""
    v = v.astype(jnp.float32)
    norm = jnp.sqrt(jnp.sum(v * v, axis=(1, 2), keepdims=True))
    return g.astype(jnp.float32) * v / norm


def _flatten_taps(w):
    """(C_out, C_in, K) -> (C_out, K*C_in), tap-major to match the im2col stack."""
    co, ci, k = w.shape
    return jnp.transpose(w, (0, 2, 1)).reshape(co, k * ci)


def temporal_block_forward(x, params, *, kernel_size, stride, dilation, padding,
                           dropout=0.2, batch_tile=2):
    """Mirrors TemporalBlock.forward(x) at inference.  x: (B, C_in, L)."""
    del dropout  # nn.Dropout is identity in eval mode
    assert stride == 1, "TemporalBlock kernel assumes stride == 1 (standard TCN usage)"
    assert padding == (kernel_size - 1) * dilation, (
        "residual add requires padding == (kernel_size - 1) * dilation")

    B, C_in, L = x.shape
    C_out = params["conv1_v"].shape[0]
    has_downsample = "down_w" in params
    pad = padding

    # Lane-dense tiling: output length padded to a multiple of 128; input pre-padded
    # (causal zeros on the left, alignment zeros on the right) ONCE in HBM so the
    # kernel never concatenates padding on the activation path.
    Lp = _round_up(L, 128)
    Lin = _round_up(pad + Lp, 128)
    x_pad = jnp.pad(x, ((0, 0), (0, 0), (pad, Lin - pad - L)))

    # Largest batch tile <= batch_tile that divides B (amortizes per-step overhead
    # while keeping >1 parallel grid step when possible for megacore sharding).
    Bt = max(d for d in range(1, max(1, batch_tile) + 1) if B % d == 0)

    # One-time parameter prep: fold weight_norm, flatten taps, cast to bf16 for MXU.
    w1 = _flatten_taps(weight_norm_effective(params["conv1_v"], params["conv1_g"])
                       ).astype(jnp.bfloat16)
    w2 = _flatten_taps(weight_norm_effective(params["conv2_v"], params["conv2_g"])
                       ).astype(jnp.bfloat16)
    b1 = params["conv1_b"].reshape(C_out, 1).astype(jnp.float32)
    b2 = params["conv2_b"].reshape(C_out, 1).astype(jnp.float32)

    def full_spec(shape):
        n = len(shape)
        return pl.BlockSpec(shape, lambda b, _n=n: (0,) * _n)

    in_specs = [
        pl.BlockSpec((Bt, C_in, Lin), lambda b: (b, 0, 0)),
        full_spec(w1.shape), full_spec(b1.shape),
        full_spec(w2.shape), full_spec(b2.shape),
    ]
    args = [x_pad, w1, b1, w2, b2]
    if has_downsample:
        wd = params["down_w"][:, :, 0].astype(jnp.bfloat16)    # (C_out, C_in)
        bd = params["down_b"].reshape(C_out, 1).astype(jnp.float32)
        in_specs += [full_spec(wd.shape), full_spec(bd.shape)]
        args += [wd, bd]

    kernel = functools.partial(
        temporal_block_kernel, kernel_size=kernel_size, dilation=dilation,
        out_len=Lp, has_downsample=has_downsample)

    out = pl.pallas_call(
        kernel,
        out_shape=jax.ShapeDtypeStruct((B, C_out, Lp), jnp.float32),
        grid=(B // Bt,),
        in_specs=in_specs,
        out_specs=pl.BlockSpec((Bt, C_out, Lp), lambda b: (b, 0, 0)),
        scratch_shapes=[pltpu.VMEM((C_out, pad + Lp), jnp.bfloat16)],
        compiler_params=pltpu.CompilerParams(dimension_semantics=("parallel",)),
    )(*args)
    # TODO(synk): for very long sequences add an L-tile grid axis with a 2*pad halo
    # (recompute overlap) so a single full-L block never exceeds v7x's 64 MiB VMEM.
    return out[:, :, :L]


def _reference_forward(x, params, *, kernel_size, stride, dilation, padding):
    """Pure-JAX f32 reference matching PyTorch TemporalBlock (eval mode)."""
    B, C_in, L = x.shape

    def conv1d(inp, w, b, pad, dil):
        out = lax.conv_general_dilated(
            inp, w, window_strides=(stride,), padding=[(pad, pad)],
            rhs_dilation=(dil,), dimension_numbers=("NCH", "OIH", "NCH"))
        return out + b[None, :, None]

    w1 = weight_norm_effective(params["conv1_v"], params["conv1_g"])
    w2 = weight_norm_effective(params["conv2_v"], params["conv2_g"])
    h = conv1d(x, w1, params["conv1_b"], padding, dilation)[:, :, :L]     # chomp1
    h = jnp.maximum(h, 0.0)
    h = conv1d(h, w2, params["conv2_b"], padding, dilation)[:, :, :L]     # chomp2
    h = jnp.maximum(h, 0.0)
    if "down_w" in params:
        res = lax.conv_general_dilated(
            x, params["down_w"], window_strides=(1,), padding=[(0, 0)],
            dimension_numbers=("NCH", "OIH", "NCH")) + params["down_b"][None, :, None]
    else:
        res = x
    return jnp.maximum(h + res, 0.0)


def init_params(keys, n_inputs, n_outputs, kernel_size):
    k1, k2, k3, k4, k5, k6, k7, k8 = keys
    normal = lambda k, s, std: std * jax.random.normal(k, s, jnp.float32)
    params = {
        "conv1_v": normal(k1, (n_outputs, n_inputs, kernel_size), 0.01),
        "conv1_g": jax.random.uniform(k2, (n_outputs, 1, 1), jnp.float32, 0.5, 1.5),
        "conv1_b": normal(k3, (n_outputs,), 0.05),
        "conv2_v": normal(k4, (n_outputs, n_outputs, kernel_size), 0.01),
        "conv2_g": jax.random.uniform(k5, (n_outputs, 1, 1), jnp.float32, 0.5, 1.5),
        "conv2_b": normal(k6, (n_outputs,), 0.05),
    }
    if n_inputs != n_outputs:
        params["down_w"] = normal(k7, (n_outputs, n_inputs, 1), 0.01)
        params["down_b"] = normal(k8, (n_outputs,), 0.05)
    return params


if __name__ == "__main__":
    def run_case(case_key, B, C_in, C_out, L, kernel_size, dilation, batch_tile):
        stride = 1
        padding = (kernel_size - 1) * dilation      # causal padding, as in TCN
        k_x, *k_p = jax.random.split(case_key, 9)
        x = jax.random.normal(k_x, (B, C_in, L), jnp.float32)
        params = init_params(k_p, C_in, C_out, kernel_size)

        out = temporal_block_forward(x, params, kernel_size=kernel_size,
                                     stride=stride, dilation=dilation,
                                     padding=padding, batch_tile=batch_tile)
        out = jax.block_until_ready(out)

        ref = _reference_forward(x, params, kernel_size=kernel_size, stride=stride,
                                 dilation=dilation, padding=padding)
        assert out.shape == (B, C_out, L)
        err = float(jnp.max(jnp.abs(out - ref)))
        # bf16 MXU operands with f32 accumulation -> looser tolerance than pure f32.
        assert jnp.allclose(out, ref, atol=3e-2, rtol=3e-2), err

    key = jax.random.PRNGKey(0)
    k1, k2 = jax.random.split(key)
    # 1) 1x1-conv downsample residual path (C_in != C_out), Bt=2, grid=(2,)
    run_case(k1, B=4, C_in=16, C_out=32, L=16, kernel_size=3, dilation=2, batch_tile=2)
    # 2) identity residual path (C_in == C_out)
    run_case(k2, B=2, C_in=32, C_out=32, L=16, kernel_size=3, dilation=1, batch_tile=2)
    print("KERNEL_OK")
</pallas_src>

<mosaic_0001>
module attributes {stable_mosaic.version = 11 : i64} {
  func.func @temporal_block_kernel(%arg0: i32, %arg1: memref<2x16x256xf32, #tpu.memory_space<vmem>>, %arg2: memref<32x48xbf16, #tpu.memory_space<vmem>>, %arg3: memref<32x1xf32, #tpu.memory_space<vmem>>, %arg4: memref<32x96xbf16, #tpu.memory_space<vmem>>, %arg5: memref<32x1xf32, #tpu.memory_space<vmem>>, %arg6: memref<32x16xbf16, #tpu.memory_space<vmem>>, %arg7: memref<32x1xf32, #tpu.memory_space<vmem>>, %arg8: memref<2x32x128xf32, #tpu.memory_space<vmem>>, %arg9: memref<32x132xbf16, #tpu.memory_space<vmem>>) attributes {dimension_semantics = [#tpu.dimension_semantics<parallel>], iteration_bounds = array<i64: 2>, scalar_prefetch = 0 : i64, scratch_operands = 1 : i64, tpu.core_type = #tpu.core_type<tc>, window_params = [{transform_indices = @transform_0, window_bounds = array<i64: 2, 16, 256>}, {pipeline_mode = #tpu.pipeline_mode<synchronous>, transform_indices = @transform_1, window_bounds = array<i64: 32, 48>}, {pipeline_mode = #tpu.pipeline_mode<synchronous>, transform_indices = @transform_2, window_bounds = array<i64: 32, 1>}, {pipeline_mode = #tpu.pipeline_mode<synchronous>, transform_indices = @transform_3, window_bounds = array<i64: 32, 96>}, {pipeline_mode = #tpu.pipeline_mode<synchronous>, transform_indices = @transform_4, window_bounds = array<i64: 32, 1>}, {pipeline_mode = #tpu.pipeline_mode<synchronous>, transform_indices = @transform_5, window_bounds = array<i64: 32, 16>}, {pipeline_mode = #tpu.pipeline_mode<synchronous>, transform_indices = @transform_6, window_bounds = array<i64: 32, 1>}, {transform_indices = @transform_7, window_bounds = array<i64: 2, 32, 128>}]} {
    %c0 = arith.constant 0 : index
    %c0_0 = arith.constant 0 : index
    %0 = vector.load %arg2[%c0, %c0_0] : memref<32x48xbf16, #tpu.memory_space<vmem>>, vector<32x48xbf16>
    %c0_1 = arith.constant 0 : index
    %c0_2 = arith.constant 0 : index
    %1 = vector.load %arg3[%c0_1, %c0_2] : memref<32x1xf32, #tpu.memory_space<vmem>>, vector<32x1xf32>
    %c0_3 = arith.constant 0 : index
    %c0_4 = arith.constant 0 : index
    %2 = vector.load %arg4[%c0_3, %c0_4] : memref<32x96xbf16, #tpu.memory_space<vmem>>, vector<32x96xbf16>
    %c0_5 = arith.constant 0 : index
    %c0_6 = arith.constant 0 : index
    %3 = vector.load %arg5[%c0_5, %c0_6] : memref<32x1xf32, #tpu.memory_space<vmem>>, vector<32x1xf32>
    %c0_7 = arith.constant 0 : index
    %c0_8 = arith.constant 0 : index
    %4 = vector.load %arg6[%c0_7, %c0_8] : memref<32x16xbf16, #tpu.memory_space<vmem>>, vector<32x16xbf16>
    %c0_9 = arith.constant 0 : index
    %c0_10 = arith.constant 0 : index
    %5 = vector.load %arg7[%c0_9, %c0_10] : memref<32x1xf32, #tpu.memory_space<vmem>>, vector<32x1xf32>
    %cst = arith.constant 0.000000e+00 : bf16
    %6 = vector.broadcast %cst : bf16 to vector<32x4xbf16>
    %c0_11 = arith.constant 0 : index
    %c0_12 = arith.constant 0 : index
    %7 = vector.load %arg9[%c0_11, %c0_12] : memref<32x132xbf16, #tpu.memory_space<vmem>>, vector<32x4xbf16>
    tpu.vector_store %arg9[%c0_11, %c0_12], %6 {strides = array<i32>} : memref<32x132xbf16, #tpu.memory_space<vmem>>, vector<32x4xbf16>,
    %c0_13 = arith.constant 0 : index
    %c0_14 = arith.constant 0 : index
    %c0_15 = arith.constant 0 : index
    %8 = vector.load %arg1[%c0_13, %c0_14, %c0_15] : memref<2x16x256xf32, #tpu.memory_space<vmem>>, vector<1x16x128xf32>
    %9 = vector.shape_cast %8 : vector<1x16x128xf32> to vector<16x128xf32>
    %10 = arith.truncf %9 : vector<16x128xf32> to vector<16x128xbf16>
    %c0_16 = arith.constant 0 : index
    %c0_17 = arith.constant 0 : index
    %c2 = arith.constant 2 : index
    %11 = vector.load %arg1[%c0_16, %c0_17, %c2] : memref<2x16x256xf32, #tpu.memory_space<vmem>>, vector<1x16x128xf32>
    %12 = vector.shape_cast %11 : vector<1x16x128xf32> to vector<16x128xf32>
    %13 = arith.truncf %12 : vector<16x128xf32> to vector<16x128xbf16>
    %c0_18 = arith.constant 0 : index
    %c0_19 = arith.constant 0 : index
    %c4 = arith.constant 4 : index
    %14 = vector.load %arg1[%c0_18, %c0_19, %c4] : memref<2x16x256xf32, #tpu.memory_space<vmem>>, vector<1x16x128xf32>
    %15 = vector.shape_cast %14 : vector<1x16x128xf32> to vector<16x128xf32>
    %16 = arith.truncf %15 : vector<16x128xf32> to vector<16x128xbf16>
    %17 = tpu.concatenate %10, %13, %16 in 0 : vector<16x128xbf16>, vector<16x128xbf16>, vector<16x128xbf16> -> vector<48x128xbf16>
    %cst_20 = arith.constant dense<0.000000e+00> : vector<32x128xf32>
    %18 = tpu.matmul %0, %17, %cst_20 {dimension_numbers = #tpu.dot_dimension_numbers<[1], [0], [0], [1], [0, 0, 1, 1], [], []>} : vector<32x48xbf16>, vector<48x128xbf16>, vector<32x128xf32> -> vector<32x128xf32>
    %19 = vector.broadcast %1 : vector<32x1xf32> to vector<32x128xf32>
    %20 = arith.addf %18, %19 : vector<32x128xf32>
    %cst_21 = arith.constant 0.000000e+00 : f32
    %21 = vector.broadcast %cst_21 : f32 to vector<32x128xf32>
    %22 = arith.maximumf %20, %21 : vector<32x128xf32>
    %23 = arith.truncf %22 : vector<32x128xf32> to vector<32x128xbf16>
    %c0_22 = arith.constant 0 : index
    %c4_23 = arith.constant 4 : index
    %24 = vector.load %arg9[%c0_22, %c4_23] : memref<32x132xbf16, #tpu.memory_space<vmem>>, vector<32x128xbf16>
    tpu.vector_store %arg9[%c0_22, %c4_23], %23 {strides = array<i32>} : memref<32x132xbf16, #tpu.memory_space<vmem>>, vector<32x128xbf16>,
    %c0_24 = arith.constant 0 : index
    %c0_25 = arith.constant 0 : index
    %25 = vector.load %arg9[%c0_24, %c0_25] : memref<32x132xbf16, #tpu.memory_space<vmem>>, vector<32x128xbf16>
    %c0_26 = arith.constant 0 : index
    %c2_27 = arith.constant 2 : index
    %26 = vector.load %arg9[%c0_26, %c2_27] : memref<32x132xbf16, #tpu.memory_space<vmem>>, vector<32x128xbf16>
    %c0_28 = arith.constant 0 : index
    %c4_29 = arith.constant 4 : index
    %27 = vector.load %arg9[%c0_28, %c4_29] : memref<32x132xbf16, #tpu.memory_space<vmem>>, vector<32x128xbf16>
    %28 = tpu.concatenate %25, %26, %27 in 0 : vector<32x128xbf16>, vector<32x128xbf16>, vector<32x128xbf16> -> vector<96x128xbf16>
    %cst_30 = arith.constant dense<0.000000e+00> : vector<32x128xf32>
    %29 = tpu.matmul %2, %28, %cst_30 {dimension_numbers = #tpu.dot_dimension_numbers<[1], [0], [0], [1], [0, 0, 1, 1], [], []>} : vector<32x96xbf16>, vector<96x128xbf16>, vector<32x128xf32> -> vector<32x128xf32>
    %30 = vector.broadcast %3 : vector<32x1xf32> to vector<32x128xf32>
    %31 = arith.addf %29, %30 : vector<32x128xf32>
    %cst_31 = arith.constant 0.000000e+00 : f32
    %32 = vector.broadcast %cst_31 : f32 to vector<32x128xf32>
    %33 = arith.maximumf %31, %32 : vector<32x128xf32>
    %c0_32 = arith.constant 0 : index
    %c0_33 = arith.constant 0 : index
    %c4_34 = arith.constant 4 : index
    %34 = vector.load %arg1[%c0_32, %c0_33, %c4_34] : memref<2x16x256xf32, #tpu.memory_space<vmem>>, vector<1x16x128xf32>
    %35 = vector.shape_cast %34 : vector<1x16x128xf32> to vector<16x128xf32>
    %36 = arith.truncf %35 : vector<16x128xf32> to vector<16x128xbf16>
    %cst_35 = arith.constant dense<0.000000e+00> : vector<32x128xf32>
    %37 = tpu.matmul %4, %36, %cst_35 {dimension_numbers = #tpu.dot_dimension_numbers<[1], [0], [0], [1], [0, 0, 1, 1], [], []>} : vector<32x16xbf16>, vector<16x128xbf16>, vector<32x128xf32> -> vector<32x128xf32>
    %38 = vector.broadcast %5 : vector<32x1xf32> to vector<32x128xf32>
    %39 = arith.addf %37, %38 : vector<32x128xf32>
    %40 = arith.addf %33, %39 : vector<32x128xf32>
    %cst_36 = arith.constant 0.000000e+00 : f32
    %41 = vector.broadcast %cst_36 : f32 to vector<32x128xf32>
    %42 = arith.maximumf %40, %41 : vector<32x128xf32>
    %c0_37 = arith.constant 0 : index
    %c0_38 = arith.constant 0 : index
    %c0_39 = arith.constant 0 : index
    %43 = vector.load %arg8[%c0_37, %c0_38, %c0_39] : memref<2x32x128xf32, #tpu.memory_space<vmem>>, vector<1x32x128xf32>
    %44 = vector.shape_cast %43 : vector<1x32x128xf32> to vector<32x128xf32>
    %45 = vector.shape_cast %42 : vector<32x128xf32> to vector<1x32x128xf32>
    tpu.vector_store %arg8[%c0_37, %c0_38, %c0_39], %45 {strides = array<i32>} : memref<2x32x128xf32, #tpu.memory_space<vmem>>, vector<1x32x128xf32>,
    %c1 = arith.constant 1 : index
    %c0_40 = arith.constant 0 : index
    %c0_41 = arith.constant 0 : index
    %46 = vector.load %arg1[%c1, %c0_40, %c0_41] : memref<2x16x256xf32, #tpu.memory_space<vmem>>, vector<1x16x128xf32>
    %47 = vector.shape_cast %46 : vector<1x16x128xf32> to vector<16x128xf32>
    %48 = arith.truncf %47 : vector<16x128xf32> to vector<16x128xbf16>
    %c1_42 = arith.constant 1 : index
    %c0_43 = arith.constant 0 : index
    %c2_44 = arith.constant 2 : index
    %49 = vector.load %arg1[%c1_42, %c0_43, %c2_44] : memref<2x16x256xf32, #tpu.memory_space<vmem>>, vector<1x16x128xf32>
    %50 = vector.shape_cast %49 : vector<1x16x128xf32> to vector<16x128xf32>
    %51 = arith.truncf %50 : vector<16x128xf32> to vector<16x128xbf16>
    %c1_45 = arith.constant 1 : index
    %c0_46 = arith.constant 0 : index
    %c4_47 = arith.constant 4 : index
    %52 = vector.load %arg1[%c1_45, %c0_46, %c4_47] : memref<2x16x256xf32, #tpu.memory_space<vmem>>, vector<1x16x128xf32>
    %53 = vector.shape_cast %52 : vector<1x16x128xf32> to vector<16x128xf32>
    %54 = arith.truncf %53 : vector<16x128xf32> to vector<16x128xbf16>
    %55 = tpu.concatenate %48, %51, %54 in 0 : vector<16x128xbf16>, vector<16x128xbf16>, vector<16x128xbf16> -> vector<48x128xbf16>
    %cst_48 = arith.constant dense<0.000000e+00> : vector<32x128xf32>
    %56 = tpu.matmul %0, %55, %cst_48 {dimension_numbers = #tpu.dot_dimension_numbers<[1], [0], [0], [1], [0, 0, 1, 1], [], []>} : vector<32x48xbf16>, vector<48x128xbf16>, vector<32x128xf32> -> vector<32x128xf32>
    %57 = vector.broadcast %1 : vector<32x1xf32> to vector<32x128xf32>
    %58 = arith.addf %56, %57 : vector<32x128xf32>
    %cst_49 = arith.constant 0.000000e+00 : f32
    %59 = vector.broadcast %cst_49 : f32 to vector<32x128xf32>
    %60 = arith.maximumf %58, %59 : vector<32x128xf32>
    %61 = arith.truncf %60 : vector<32x128xf32> to vector<32x128xbf16>
    %c0_50 = arith.constant 0 : index
    %c4_51 = arith.constant 4 : index
    %62 = vector.load %arg9[%c0_50, %c4_51] : memref<32x132xbf16, #tpu.memory_space<vmem>>, vector<32x128xbf16>
    tpu.vector_store %arg9[%c0_50, %c4_51], %61 {strides = array<i32>} : memref<32x132xbf16, #tpu.memory_space<vmem>>, vector<32x128xbf16>,
    %c0_52 = arith.constant 0 : index
    %c0_53 = arith.constant 0 : index
    %63 = vector.load %arg9[%c0_52, %c0_53] : memref<32x132xbf16, #tpu.memory_space<vmem>>, vector<32x128xbf16>
    %c0_54 = arith.constant 0 : index
    %c2_55 = arith.constant 2 : index
    %64 = vector.load %arg9[%c0_54, %c2_55] : memref<32x132xbf16, #tpu.memory_space<vmem>>, vector<32x128xbf16>
    %c0_56 = arith.constant 0 : index
    %c4_57 = arith.constant 4 : index
    %65 = vector.load %arg9[%c0_56, %c4_57] : memref<32x132xbf16, #tpu.memory_space<vmem>>, vector<32x128xbf16>
    %66 = tpu.concatenate %63, %64, %65 in 0 : vector<32x128xbf16>, vector<32x128xbf16>, vector<32x128xbf16> -> vector<96x128xbf16>
    %cst_58 = arith.constant dense<0.000000e+00> : vector<32x128xf32>
    %67 = tpu.matmul %2, %66, %cst_58 {dimension_numbers = #tpu.dot_dimension_numbers<[1], [0], [0], [1], [0, 0, 1, 1], [], []>} : vector<32x96xbf16>, vector<96x128xbf16>, vector<32x128xf32> -> vector<32x128xf32>
    %68 = vector.broadcast %3 : vector<32x1xf32> to vector<32x128xf32>
    %69 = arith.addf %67, %68 : vector<32x128xf32>
    %cst_59 = arith.constant 0.000000e+00 : f32
    %70 = vector.broadcast %cst_59 : f32 to vector<32x128xf32>
    %71 = arith.maximumf %69, %70 : vector<32x128xf32>
    %c1_60 = arith.constant 1 : index
    %c0_61 = arith.constant 0 : index
    %c4_62 = arith.constant 4 : index
    %72 = vector.load %arg1[%c1_60, %c0_61, %c4_62] : memref<2x16x256xf32, #tpu.memory_space<vmem>>, vector<1x16x128xf32>
    %73 = vector.shape_cast %72 : vector<1x16x128xf32> to vector<16x128xf32>
    %74 = arith.truncf %73 : vector<16x128xf32> to vector<16x128xbf16>
    %cst_63 = arith.constant dense<0.000000e+00> : vector<32x128xf32>
    %75 = tpu.matmul %4, %74, %cst_63 {dimension_numbers = #tpu.dot_dimension_numbers<[1], [0], [0], [1], [0, 0, 1, 1], [], []>} : vector<32x16xbf16>, vector<16x128xbf16>, vector<32x128xf32> -> vector<32x128xf32>
    %76 = vector.broadcast %5 : vector<32x1xf32> to vector<32x128xf32>
    %77 = arith.addf %75, %76 : vector<32x128xf32>
    %78 = arith.addf %71, %77 : vector<32x128xf32>
    %cst_64 = arith.constant 0.000000e+00 : f32
    %79 = vector.broadcast %cst_64 : f32 to vector<32x128xf32>
    %80 = arith.maximumf %78, %79 : vector<32x128xf32>
    %c1_65 = arith.constant 1 : index
    %c0_66 = arith.constant 0 : index
    %c0_67 = arith.constant 0 : index
    %81 = vector.load %arg8[%c1_65, %c0_66, %c0_67] : memref<2x32x128xf32, #tpu.memory_space<vmem>>, vector<1x32x128xf32>
    %82 = vector.shape_cast %81 : vector<1x32x128xf32> to vector<32x128xf32>
    %83 = vector.shape_cast %80 : vector<32x128xf32> to vector<1x32x128xf32>
    tpu.vector_store %arg8[%c1_65, %c0_66, %c0_67], %83 {strides = array<i32>} : memref<2x32x128xf32, #tpu.memory_space<vmem>>, vector<1x32x128xf32>,
    return
  }
  func.func @transform_0(%arg0: i32) -> (i32, i32, i32) {
    %c0_i32 = arith.constant 0 : i32
    %c0_i32_0 = arith.constant 0 : i32
    %c0_i32_1 = arith.constant 0 : i32
    return %arg0, %c0_i32, %c0_i32_0 : i32, i32, i32
  }
  func.func @transform_1(%arg0: i32) -> (i32, i32) {
    %c0_i32 = arith.constant 0 : i32
    %c0_i32_0 = arith.constant 0 : i32
    %c0_i32_1 = arith.constant 0 : i32
    return %c0_i32, %c0_i32_0 : i32, i32
  }
  func.func @transform_2(%arg0: i32) -> (i32, i32) {
    %c0_i32 = arith.constant 0 : i32
    %c0_i32_0 = arith.constant 0 : i32
    %c0_i32_1 = arith.constant 0 : i32
    return %c0_i32, %c0_i32_0 : i32, i32
  }
  func.func @transform_3(%arg0: i32) -> (i32, i32) {
    %c0_i32 = arith.constant 0 : i32
    %c0_i32_0 = arith.constant 0 : i32
    %c0_i32_1 = arith.constant 0 : i32
    return %c0_i32, %c0_i32_0 : i32, i32
  }
  func.func @transform_4(%arg0: i32) -> (i32, i32) {
    %c0_i32 = arith.constant 0 : i32
    %c0_i32_0 = arith.constant 0 : i32
    %c0_i32_1 = arith.constant 0 : i32
    return %c0_i32, %c0_i32_0 : i32, i32
  }
  func.func @transform_5(%arg0: i32) -> (i32, i32) {
    %c0_i32 = arith.constant 0 : i32
    %c0_i32_0 = arith.constant 0 : i32
    %c0_i32_1 = arith.constant 0 : i32
    return %c0_i32, %c0_i32_0 : i32, i32
  }
  func.func @transform_6(%arg0: i32) -> (i32, i32) {
    %c0_i32 = arith.constant 0 : i32
    %c0_i32_0 = arith.constant 0 : i32
    %c0_i32_1 = arith.constant 0 : i32
    return %c0_i32, %c0_i32_0 : i32, i32
  }
  func.func @transform_7(%arg0: i32) -> (i32, i32, i32) {
    %c0_i32 = arith.constant 0 : i32
    %c0_i32_0 = arith.constant 0 : i32
    %c0_i32_1 = arith.constant 0 : i32
    return %arg0, %c0_i32, %c0_i32_0 : i32, i32, i32
  }
}

</mosaic_0001>

<bundles_post_ra>
// kernel: tpu_custom_call.1
= control target key start
LH: loop header
LB: loop body
LE: loop exit
PB: predicated region body
PF: predicated region fallthrough
CT: control target
= control target key end

     0   :  { %12 = vsyncpa [#allocation4], 0  ;;  %s1709_s0 = inlined_call_operand.hbm [shape: f32[4,16,256], index: 0, kind: input, shape index: {}]   ;;  %s1710_s1 = inlined_call_operand.vmem [shape: bf16[32,48], index: 1, kind: input, shape index: {}]   ;;  %s1711_s2 = inlined_call_operand.vmem [shape: f32[32,1], index: 2, kind: input, shape index: {}]   ;;  %s1712_s3 = inlined_call_operand.vmem [shape: bf16[32,96], index: 3, kind: input, shape index: {}]   ;;  %s1713_s4 = inlined_call_operand.vmem [shape: f32[32,1], index: 4, kind: input, shape index: {}]   ;;  %s1714_s5 = inlined_call_operand.vmem [shape: bf16[32,16], index: 5, kind: input, shape index: {}]   ;;  %s1715_s6 = inlined_call_operand.vmem [shape: f32[32,1], index: 6, kind: input, shape index: {}]   ;;  %s1716_s7 = inlined_call_operand.hbm [shape: f32[4,32,128], index: 7, kind: output, shape index: {}]  }
   0x1   :  { %14 = vsyncpa [#allocation4 + $0x1], 0 }
   0x2   :  { %15 = vsyncpa [#allocation5], 0 }
   0x3   :  { %17 = vsyncpa [#allocation5 + $0x1], 0  ;;  %s1382_s24 = smov 0   ;;  %s1384_s25 = smov 0  }
   0x4   :  { %s1386_s26 = smov 0   ;;  %s1388_s27 = smov 0  }
   0x5 LB: > { %s1403_s28 = sadd.s32 4294967295, %s1330_s27   ;;  %s1026_s29 = sadd.s32 4294967294, %s1330_s27   ;;  %s1330_s27 = sphi %s1388_s27, %s1729_s27   ;;  %s1326_s26 = sphi %s1386_s26, %s1728_s26   ;;  %s1322_s25 = sphi %s1384_s25, %s1727_s25   ;;  %s1318_s24 = sphi %s1382_s24, %s1726_s24  }
   0x6   : > { %s1407_s30 = sadd.s32 1, %s1330_s27   ;;  %s30_s8 = sadd.s32 1, %s1326_s26 }
   0x7   : > { %s27_s9 = ssub.s32 %s1330_s27, %s1407_s30  ;;  %p37_p0 = scmp.ne.s32.totalorder %s1326_s26, %s1322_s25 }
   0x8   : > { %p28_p1 = scmp.eq.s32.totalorder %s27_s9, 0  ;;  %p38_p2 = scmp.eq.s32.totalorder %s1330_s27, 0 }
   0x9   : > { %p43_p3 = scmp.ne.s32.totalorder %s1322_s25, %s1318_s24  ;;  %p44_p4 = scmp.eq.s32.totalorder %s1403_s28, 0 }
   0xa   : > { %s1419_s10 = scalar_select %p28_p1, %s1326_s26, %s30_s8  }
   0xb   : > { %p1421_p5 = por %p38_p2, %p37_p0  ;;  %p1425_p6 = por %p44_p4, %p43_p3 }
   0xc   : > { %p193_p7 = scmp.eq.s32.totalorder %s1403_s28, 1  ;;  %p199_p8 = scmp.eq.s32.totalorder %s1026_s29, 1 }
   0xd   : > { %p1184_p10 = scmp.lt.s32.totalorder %s1330_s27, 2  ;;  %s237_s15 = sand.u32 1, %s1326_s26  }
   0xe   : > { %p1432_p11 = por %p193_p7, %p37_p0  ;;  %p1436_p12 = por %p199_p8, %p43_p3 }
   0xf   : > { %s1073_s16 = sshll.u32 %s1330_s27, 10  ;;  %s1029_s17 = sshll.u32 %s237_s15, 6 }
  0x10   : > { %s1720_s13 = scalar_select %p1432_p11, 1, 0 }
  0x11   : > { %s1721_s14 = scalar_select %p1436_p12, 1, 0 }
  0x12   : > { %s1445_s20 = scalar_lea.hbm %s1709_s0, %s1073_s16  ;;  %s241_s21 = scalar_lea.vmem [#allocation3], %s1029_s17 }
  0x13   : > { %s249_s22 = sshll.u32 %s241_s21, 4  ;;  %p1449_p13 = pnand %p1184_p10, %p1421_p5  ;;  %s1453_s22 = int_to_ptr.vmem [resolvable:$true] %s249_s22 }
  0x14   : > { %s1455_s29 = scalar_lea.sflag [#allocation4], %s237_s15  ;;  %s1234_s8 = scalar_lea.hbm %s1445_s20, 1024 }
  0x15   : > { %p1235_p0 = scmp.ne.s32.totalorder %s1445_s20, %s1234_s8  ;;  %p1236_p1 = pneg %p1449_p13 }
  0x16   : > { %s1239_s16 = scalar_lea.hbm %s1709_s0, 2048  ;;  %p1240_p4 = scmp.lt.u32.totalorder %s1445_s20, %s1709_s0 }
  0x17   : > { %p1237_p2 = pnand %p1236_p1, %p1235_p0  ;;  %p1241_p5 = scmp.lt.u32.totalorder %s1239_s16, %s1234_s8 }
  0x18   : > { %p1243_p8 = scmp.lt.u32.totalorder %s1234_s8, %s1445_s20 }
  0x19   : > { %p1238_p3 = pneg %p1237_p2  ;;  %p1242_p7 = por %p1241_p5, %p1240_p4 }
  0x1b   : > { %p1244_p10 = por %p1243_p8, %p1242_p7 }
  0x1d   : > { %p1245_p9 = pnand %p1244_p10, %p1238_p3 }
  0x1f   : > { %1248 = shalt.err (!%p1245_p9)
}
  0x20   : > { %s1249_s15 = scalar_lea.vmem %s1453_s22, 1024  ;;  %s1332_s19 = smov [#allocation3]  }
  0x21   : > { %p1250_p0 = scmp.ne.s32.totalorder %s1453_s22, %s1249_s15  ;;  %s1254_s21 = sshll.u32 %s1332_s19, 4  ;;  %s1255_s21 = int_to_ptr.vmem [resolvable:$false] %s1254_s21 }
  0x22   : > { %s1256_s9 = scalar_lea.vmem %s1255_s21, 2048  ;;  %p1257_p11 = scmp.lt.s32.totalorder %s1453_s22, %s1255_s21 }
  0x23   : > { %p1252_p2 = pnand %p1250_p0, %p1236_p1  ;;  %p1258_p4 = scmp.lt.s32.totalorder %s1256_s9, %s1249_s15 }
  0x25   : > { %p1253_p12 = pneg %p1252_p2  ;;  %p1259_p5 = por %p1258_p4, %p1257_p11 }
  0x27   : > { %p1260_p7 = pnand %p1259_p5, %p1253_p12 }
  0x29   : > { %1263 = shalt.err (!%p1260_p7)
}
  0x2a   : > { %s1333_s8 = smov 256   ;;  %s1334_s11 = smov 16  }
  0x2b   : > { %1179 = dma.hbm_to_vmem [thread:$0]  (!%p1449_p13), %s1445_s20, 1024, %s1453_s22, %s1455_s29, %s1333_s8, %s1333_s8, %s1334_s11  }
  0x2c   : > { %p1033_p9 = scmp.ge.s32.totalorder %s1330_s27, 1  ;;  %p257_p1 = scmp.lt.s32.totalorder %s1330_s27, 3 }
  0x2e   : > { %p258_p3 = pnand %p1033_p9, %p257_p1 }
  0x2f   : > { %s1486_s16 = sand.u32 (!%p258_p3), 1, %s1322_s25  }
  0x30   : > { %261 = sbr.rel (%p258_p3) target bundleno = 926 (0x39e), region = 48  ;;  %s1034_s17 = sshll.u32 (!%p258_p3), %s1486_s16, 6 }
  0x31   : > { %s264_s18 = scalar_lea.sflag (!%p258_p3), [#allocation4], %s1486_s16  ;;  %s267_s15 = scalar_lea.vmem (!%p258_p3), [#allocation3], %s1034_s17 }
  0x37   : > { %1309 = dma.done.wait (%p1425_p6), %s264_s18, 1024  }
  0x38   : > { %1311 = vsyncadd (%p1425_p6), %s264_s18, 4294966272  ;;  %v328_v0 = vld [vmem:[%s267_s15] sm:$0xff]  ;;  %v329_v1 = vld [vmem:[%s267_s15 + $0x10] sm:$0xff]  ;;  %vm380_vm0 = vcmask 392192   ;;  %s1335_s20 = smov 124   ;;  %s1336_s22 = smov 126  }
  0x39   : > { %v331_v2 = vld [vmem:[%s267_s15 + $0x8] sm:$0xff]  ;;  %v330_v3 = vpack.c.bf16 %v329_v1, %v328_v0  ;;  %v332_v4 = vld [vmem:[%s267_s15 + $0x18] sm:$0xff]  ;;  %v1228_v6 = vld [vmem:[%s1710_s1] sm:$0xff]   ;;  %v1337_v15 = vmov 0   ;;  %vm340_vm1 = vcmask 1031168   ;;  %vm347_vm2 = vcmask 1014784  }
  0x3a   : > { %v333_v5 = vpack.c.bf16 %v332_v4, %v331_v2  ;;  %1114 = vmatprep.mubr.msk.bf16.mxu0 %vm380_vm0, %v1228_v6  ;;  %v1050_v7 = vld [vmem:[%s267_s15 + $0x28] sm:$0xff]  ;;  %v1051_v8 = vld [vmem:[%s267_s15 + $0x38] sm:$0xff]  ;;  %v1048_v9 = vld [vmem:[%s267_s15 + $0x20] sm:$0xff]  ;;  %1227 = vset.pattern.permute.xlu1 %v1337_v15  ;;  %vm621_vm3 = vcmask 130048   ;;  %vm325_vm4 = vcmask 31744   ;;  %s1338_s8 = smov 4  }
  0x3b   : > { %343 = vrot.lane.b32.xlu1 %v330_v3, %s1335_s20  ;;  %336 = vrot.lane.b32.xlu0 %v330_v3, %s1336_s22  ;;  %v1049_v10 = vld [vmem:[%s267_s15 + $0x30] sm:$0xff]  ;;  %v1506_v11 = vpack.c.bf16 %v1051_v8, %v1050_v7  ;;  %v306_v13 = vld [vmem:[%s1711_s2 + $0x8] sm:$0xff]  ;;  %327 = vst.msk [vmem:[#allocation2 + $0x10] sm:$0xff] %vm325_vm4, %v1337_v15  ;;  %326 = vst.msk [vmem:[#allocation2] sm:$0xff] %vm325_vm4, %v1337_v15  ;;  %vm450_vm5 = vcmask 1047584   ;;  %vm517_vm6 = vcmask 785408  }
  0x3c   : > { %1108 = vmatprep.subr.bf16.mxu0 %v330_v3  ;;  %v1508_v12 = vpack.c.bf16 %v1049_v10, %v1048_v9  ;;  %v305_v14 = vld [vmem:[%s1711_s2] sm:$0xff]  ;;  %1226 = vset.pattern.permute.xlu0 %v1337_v15  ;;  %v307_v16 = vld [vmem:[%s1711_s2 + $0x10] sm:$0xff]  ;;  %v308_v17 = vld [vmem:[%s1711_s2 + $0x18] sm:$0xff]  ;;  %s1648_s21 = scalar_lea.vmem [#allocation6], %s1034_s17  ;;  %s1075_s9 = sshll.u32 %s1403_s28, 10 }
  0x3d   : > { %1109 = vmatpush3.bf16.msra.mxu0 %v330_v3  ;;  %v1229_v27 = vld [vmem:[%s1710_s1 + $0x8] sm:$0xff]   ;;  %v1230_v28 = vld [vmem:[%s1714_s5] sm:$0xff]   ;;  %s953_s17 = sshll.u32 %s1648_s21, 4  ;;  %s1660_s11 = scalar_lea.hbm %s1716_s7, %s1075_s9  ;;  %s1662_s17 = int_to_ptr.vmem [resolvable:$true] %s953_s17 }
  0x3e   : > { %v1545_v31 = vld [vmem:[%s1714_s5 + $0x8] sm:$0xff]   ;;  %v1574_v15 = vld [vmem:[%s1712_s3] sm:$0xff]   ;;  %s939_s28 = scalar_lea.sflag [#allocation5], %s1486_s16  ;;  %s1264_s18 = scalar_lea.vmem %s1662_s17, 1024 }
  0x3f   : > { %345 = vrot.lane.b32.xlu1 %v333_v5, %s1335_s20  ;;  %338 = vrot.lane.b32.xlu0 %v333_v5, %s1336_s22  ;;  %p1265_p6 = scmp.ne.s32.totalorder %s1662_s17, %s1264_s18  ;;  %p1723_p11 = scmp.ne.s32.totalorder %s1720_s13, 0 }
  0x40   : > { %1130 = vmatprep.mubr.msk.bf16.mxu1 %vm517_vm6, %v1574_v15  ;;  %s1339_s15 = smov [#allocation6]  }
  0x41   : > { %p1266_p12 = pnand %p1265_p6, %p1723_p11  ;;  %s1268_s23 = sshll.u32 %s1339_s15, 4  ;;  %s1269_s23 = int_to_ptr.vmem [resolvable:$false] %s1268_s23 }
  0x42   : > { %s1270_s29 = scalar_lea.vmem %s1269_s23, 2048  ;;  %p1271_p8 = scmp.lt.s32.totalorder %s1662_s17, %s1269_s23 }
  0x43   : > { %617 = vrot.lane.b32.xlu1 %v333_v5, %s1335_s20  ;;  %615 = vrot.lane.b32.xlu0 %v330_v3, %s1335_s20  ;;  %p1267_p13 = pneg %p1266_p12  ;;  %p1272_p10 = scmp.lt.s32.totalorder %s1270_s29, %s1264_s18 }
  0x45   : > { %p1273_p0 = por %p1272_p10, %p1271_p8 }
  0x47   : > { %700 = vrot.lane.b32.xlu1 %v1506_v11, %s1336_s22  ;;  %698 = vrot.lane.b32.xlu0 %v1508_v12, %s1336_s22  ;;  %p1274_p2 = pnand %p1273_p0, %p1267_p13 }
  0x4b   : > { %706 = vrot.lane.b32.xlu1 %v1506_v11, %s1335_s20  ;;  %704 = vrot.lane.b32.xlu0 %v1508_v12, %s1335_s20 }
  0x4f   : > { %357 = vperm.xlu1 %1227, %v306_v13   ;;  %352 = vperm.xlu0 %1226, %v305_v14  }
  0x53   : > { %362 = vperm.xlu1 %1227, %v307_v16   ;;  %367 = vperm.xlu0 %1226, %v308_v17  }
  0xad   : > { %v344_v18 = vpop.permute.xlu1 %343  ;;  %v337_v19 = vpop.permute.xlu0 %336 }
  0xb1   : > { %v346_v20 = vpop.permute.xlu1 %345  ;;  %v339_v21 = vpop.permute.xlu0 %338 }
  0xb2   : > { %v341_v22 = vsel %vm340_vm1, %v337_v19, %v339_v21  ;;  %v348_v23 = vsel %vm347_vm2, %v344_v18, %v346_v20 }
  0xb3   : > { %1110 = vmatprep.subr.bf16.mxu0 %v341_v22 }
  0xb4   : > { %1111 = vmatpush3.bf16.msra.mxu0 %v341_v22 }
  0xb5   : > { %1112 = vmatprep.subr.bf16.mxu0 %v348_v23  ;;  %v618_v24 = vpop.permute.xlu1 %617  ;;  %v616_v25 = vpop.permute.xlu0 %615 }
  0xb6   : > { %v619_v26 = vsel %vm347_vm2, %v616_v25, %v618_v24  ;;  %v313_v24 = vld [vmem:[%s1713_s4] sm:$0xff]  ;;  %v316_v25 = vld [vmem:[%s1713_s4 + $0x18] sm:$0xff] }
  0xb8   : > { %1113 = vmatpush3.bf16.msra.mxu0 %v348_v23  ;;  %v314_v23 = vld [vmem:[%s1713_s4 + $0x8] sm:$0xff] }
  0xb9   : > { %1134 = vmatprep.subr.bf16.mxu0 %v619_v26  ;;  %v701_v29 = vpop.permute.xlu1 %700  ;;  %v699_v30 = vpop.permute.xlu0 %698 }
  0xba   : > { %v702_v32 = vsel %vm340_vm1, %v699_v30, %v701_v29 }
  0xbb   : > { %1115 = vmatmul.mubr.msk.bf16.vlgmr.msra.gmra.mrb[0].mxu0 %vm380_vm0, %v1229_v27 }
  0xbc   : > { %1135 = vmatpush3.bf16.msra.mxu0 %v619_v26  ;;  %1136 = vmatprep.mubr.msk.bf16.mxu0 %vm621_vm3, %v1230_v28  ;;  %v321_v26 = vld [vmem:[%s1715_s6] sm:$0xff] }
  0xbd   : > { %1140 = vmatprep.subr.bf16.mxu0 %v1508_v12  ;;  %v707_v33 = vpop.permute.xlu1 %706  ;;  %v705_v34 = vpop.permute.xlu0 %704 }
  0xbe   : > { %v708_v35 = vsel %vm347_vm2, %v705_v34, %v707_v33 }
  0xc3   : > { %1137 = vmatmul.mubr.msk.bf16.vlgmr.msra.gmra.mrb[4].mxu0 %vm621_vm3, %v1545_v31 }
  0xc4   : > { %1141 = vmatpush3.bf16.msra.mxu0 %v1508_v12  ;;  %1146 = vmatprep.mubr.msk.bf16.mxu0 %vm380_vm0, %v1228_v6 }
  0xc5   : > { %1142 = vmatprep.subr.bf16.mxu0 %v702_v32 }
  0xc8   : > { %1143 = vmatpush3.bf16.msra.mxu0 %v702_v32 }
  0xc9   : > { %1144 = vmatprep.subr.bf16.mxu0 %v708_v35 }
  0xcc   : > { %1145 = vmatpush3.bf16.msra.mxu0 %v708_v35 }
  0xce   : > { %v358_v36 = vpop.permute.xlu1 %357  ;;  %v353_v37 = vpop.permute.xlu0 %352 }
  0xcf   : > { %1147 = vmatmul.mubr.msk.bf16.vlgmr.msra.gmra.mrb[8].mxu0 %vm380_vm0, %v1229_v27  ;;  %v324_v27 = vld [vmem:[%s1715_s6 + $0x18] sm:$0xff] }
  0xd0   : > { %1168 = vmatprep.mubr.msk.bf16.mxu0 %vm621_vm3, %v1230_v28  ;;  %v323_v28 = vld [vmem:[%s1715_s6 + $0x10] sm:$0xff] }
  0xd2   : > { %v363_v38 = vpop.permute.xlu1 %362  ;;  %v368_v40 = vpop.permute.xlu0 %367 }
 0x18e   : > { %v1116_v39 = vpop.f32.mrb[0].mxu0 }
 0x18f   : > { %v430_v41 = vadd.f32 %v1116_v39, %v363_v38  ;;  %v421_v42 = vpop.f32.mrb[1].mxu0 }
 0x190   : > { %v422_v43 = vadd.f32 %v421_v42, %v353_v37  ;;  %v1117_v44 = vpop.f32.mrb[2].mxu0  ;;  %v1233_v42 = vld [vmem:[%s1712_s3 + $0x8] sm:$0xff]  }
 0x191   : > { %v433_v45 = vadd.f32 %v1117_v44, %v368_v40  ;;  %v424_v46 = vpop.f32.mrb[3].mxu0  ;;  %v438_v48 = vmax.f32 %v430_v41, 0.0 }
 0x192   : > { %v425_v47 = vadd.f32 %v424_v46, %v358_v36  ;;  %v436_v50 = vmax.f32 %v422_v43, 0.0 }
 0x193   : > { %v439_v49 = vmax.f32 %v433_v45, 0.0 }
 0x194   : > { %v437_v51 = vmax.f32 %v425_v47, 0.0 }
 0x195   : > { %v441_v52 = vpack.c.bf16 %v439_v49, %v438_v48 }
 0x196   : > { %v440_v53 = vpack.c.bf16 %v437_v51, %v436_v50  ;;  %v1557_v54 = vpop.f32.mrb[4].mxu0 }
 0x197   : > { %446 = vrot.lane.b32.xlu0 %v441_v52, %s1338_s8  ;;  %v1559_v55 = vpop.f32.mrb[5].mxu0 }
 0x198   : > { %v1561_v56 = vpop.f32.mrb[6].mxu0  ;;  %444 = vrot.lane.b32.xlu1 %v440_v53, %s1338_s8 }
 0x199   : > { %v1563_v57 = vpop.f32.mrb[7].mxu0 }
 0x1a2   : > { %v1148_v58 = vpop.f32.mrb[8].mxu0 }
 0x1a3   : > { %v753_v59 = vadd.f32 %v1148_v58, %v363_v38  ;;  %v744_v60 = vpop.f32.mrb[9].mxu0 }
 0x1a4   : > { %v745_v61 = vadd.f32 %v744_v60, %v353_v37  ;;  %v1149_v62 = vpop.f32.mrb[10].mxu0 }
 0x1a5   : > { %v756_v63 = vadd.f32 %v1149_v62, %v368_v40  ;;  %v747_v0 = vpop.f32.mrb[11].mxu0  ;;  %v761_v2 = vmax.f32 %v753_v59, 0.0 }
 0x1a6   : > { %v748_v1 = vadd.f32 %v747_v0, %v358_v36  ;;  %v759_v4 = vmax.f32 %v745_v61, 0.0 }
 0x1a7   : > { %v762_v3 = vmax.f32 %v756_v63, 0.0 }
 0x1a8   : > { %v760_v5 = vmax.f32 %v748_v1, 0.0 }
 0x1a9   : > { %v764_v6 = vpack.c.bf16 %v762_v3, %v761_v2 }
 0x1aa   : > { %v763_v7 = vpack.c.bf16 %v760_v5, %v759_v4 }
 0x1ab   : > { %769 = vrot.lane.b32.xlu0 %v764_v6, %s1338_s8 }
 0x1ac   : > { %767 = vrot.lane.b32.xlu1 %v763_v7, %s1338_s8 }
 0x209   : > { %v447_v8 = vpop.permute.xlu0 %446 }
 0x20a   : > { %453 = vst.msk [vmem:[#allocation2 + $0x10] sm:$0xff] %vm450_vm5, %v447_v8  ;;  %v445_v9 = vpop.permute.xlu1 %444 }
 0x20b   : > { %454 = vst.msk [vmem:[#allocation2 + $0x18] sm:$0xff] %vm325_vm4, %v447_v8  ;;  %452 = vst.msk [vmem:[#allocation2 + $0x8] sm:$0xff] %vm325_vm4, %v445_v9 }
 0x20c   : > { %451 = vst.msk [vmem:[#allocation2] sm:$0xff] %vm450_vm5, %v445_v9 }
 0x211   : > { %v456_v14 = vld [vmem:[#allocation2 + $0x10] sm:$0xff] }
 0x212   : > { %v457_v10 = vld [vmem:[#allocation2 + $0x8] sm:$0xff]  ;;  %v458_v16 = vld [vmem:[#allocation2 + $0x18] sm:$0xff] }
 0x213   : > { %v455_v13 = vld [vmem:[#allocation2] sm:$0xff]  ;;  %465 = vrot.lane.b32.xlu0 %v457_v10, %s1336_s22 }
 0x214   : > { %463 = vrot.lane.b32.xlu1 %v455_v13, %s1336_s22  ;;  %1118 = vmatprep.subr.bf16.mxu1 %v455_v13 }
 0x215   : > { %1119 = vmatpush3.bf16.msra.mxu1 %v455_v13 }
 0x216   : > { %1120 = vmatprep.subr.bf16.mxu1 %v456_v14 }
 0x217   : > { %469 = vrot.lane.b32.xlu0 %v458_v16, %s1336_s22 }
 0x218   : > { %467 = vrot.lane.b32.xlu1 %v456_v14, %s1336_s22 }
 0x219   : > { %1121 = vmatpush3.bf16.msra.mxu1 %v456_v14 }
 0x21b   : > { %477 = vrot.lane.b32.xlu0 %v457_v10, %s1335_s20 }
 0x21c   : > { %475 = vrot.lane.b32.xlu1 %v455_v13, %s1335_s20 }
 0x21d   : > { %v770_v17 = vpop.permute.xlu0 %769 }
 0x21e   : > { %775 = vst.msk [vmem:[#allocation2 + $0x10] sm:$0xff] %vm450_vm5, %v770_v17  ;;  %v768_v18 = vpop.permute.xlu1 %767 }
 0x21f   : > { %776 = vst.msk [vmem:[#allocation2 + $0x18] sm:$0xff] %vm325_vm4, %v770_v17  ;;  %774 = vst.msk [vmem:[#allocation2 + $0x8] sm:$0xff] %vm325_vm4, %v768_v18  ;;  %481 = vrot.lane.b32.xlu0 %v458_v16, %s1335_s20 }
 0x220   : > { %773 = vst.msk [vmem:[#allocation2] sm:$0xff] %vm450_vm5, %v768_v18  ;;  %479 = vrot.lane.b32.xlu1 %v456_v14, %s1335_s20 }
 0x225   : > { %v778_v22 = vld [vmem:[#allocation2 + $0x10] sm:$0xff] }
 0x226   : > { %v779_v19 = vld [vmem:[#allocation2 + $0x8] sm:$0xff]  ;;  %v780_v21 = vld [vmem:[#allocation2 + $0x18] sm:$0xff] }
 0x227   : > { %v777_v20 = vld [vmem:[#allocation2] sm:$0xff]  ;;  %787 = vrot.lane.b32.xlu0 %v779_v19, %s1336_s22 }
 0x228   : > { %785 = vrot.lane.b32.xlu1 %v777_v20, %s1336_s22 }
 0x22b   : > { %791 = vrot.lane.b32.xlu0 %v780_v21, %s1336_s22 }
 0x22c   : > { %789 = vrot.lane.b32.xlu1 %v778_v22, %s1336_s22 }
 0x22f   : > { %799 = vrot.lane.b32.xlu0 %v779_v19, %s1335_s20 }
 0x230   : > { %797 = vrot.lane.b32.xlu1 %v777_v20, %s1335_s20 }
 0x233   : > { %803 = vrot.lane.b32.xlu0 %v780_v21, %s1335_s20 }
 0x234   : > { %801 = vrot.lane.b32.xlu1 %v778_v22, %s1335_s20 }
 0x237   : > { %872 = vrot.lane.b32.xlu0 %v1506_v11, %s1335_s20  ;;  %v315_v11 = vld [vmem:[%s1713_s4 + $0x10] sm:$0xff] }
 0x238   : > { %870 = vrot.lane.b32.xlu1 %v1508_v12, %s1335_s20  ;;  %v322_v12 = vld [vmem:[%s1715_s6 + $0x8] sm:$0xff] }
 0x23b   : > { %494 = vperm.xlu0 %1226, %v314_v23  }
 0x23c   : > { %489 = vperm.xlu1 %1227, %v313_v24  }
 0x23f   : > { %504 = vperm.xlu0 %1226, %v316_v25  }
 0x240   : > { %499 = vperm.xlu1 %1227, %v315_v11  }
 0x243   : > { %590 = vperm.xlu0 %1226, %v322_v12  }
 0x244   : > { %585 = vperm.xlu1 %1227, %v321_v26  }
 0x247   : > { %600 = vperm.xlu0 %1226, %v324_v27  }
 0x248   : > { %595 = vperm.xlu1 %1227, %v323_v28  }
 0x285   : > { %v466_v29 = vpop.permute.xlu0 %465 }
 0x286   : > { %v464_v30 = vpop.permute.xlu1 %463 }
 0x287   : > { %v471_v32 = vsel %vm340_vm1, %v464_v30, %v466_v29 }
 0x288   : > { %1122 = vmatprep.subr.bf16.mxu1 %v471_v32 }
 0x289   : > { %1123 = vmatpush3.bf16.msra.mxu1 %v471_v32  ;;  %v470_v33 = vpop.permute.xlu0 %469 }
 0x28a   : > { %v468_v34 = vpop.permute.xlu1 %467 }
 0x28b   : > { %v472_v35 = vsel %vm340_vm1, %v468_v34, %v470_v33 }
 0x28c   : > { %1124 = vmatprep.subr.bf16.mxu1 %v472_v35 }
 0x28d   : > { %1125 = vmatpush3.bf16.msra.mxu1 %v472_v35  ;;  %v478_v36 = vpop.permute.xlu0 %477 }
 0x28e   : > { %v476_v37 = vpop.permute.xlu1 %475 }
 0x28f   : > { %v483_v38 = vsel %vm347_vm2, %v476_v37, %v478_v36 }
 0x290   : > { %1126 = vmatprep.subr.bf16.mxu1 %v483_v38 }
 0x291   : > { %1127 = vmatpush3.bf16.msra.mxu1 %v483_v38  ;;  %v482_v39 = vpop.permute.xlu0 %481 }
 0x292   : > { %v480_v40 = vpop.permute.xlu1 %479 }
 0x293   : > { %v484_v41 = vsel %vm347_vm2, %v480_v40, %v482_v39 }
 0x294   : > { %1128 = vmatprep.subr.bf16.mxu1 %v484_v41 }
 0x295   : > { %1129 = vmatpush3.bf16.msra.mxu1 %v484_v41 }
 0x296   : > { %1150 = vmatprep.subr.bf16.mxu1 %v777_v20 }
 0x298   : > { %1131 = vmatmul.mubr.msk.bf16.vlgmr.msra.gmra.mrb[0].mxu1 %vm517_vm6, %v1233_v42 }
 0x299   : > { %1151 = vmatpush3.bf16.msra.mxu1 %v777_v20  ;;  %1162 = vmatprep.mubr.msk.bf16.mxu1 %vm517_vm6, %v1574_v15  ;;  %v788_v43 = vpop.permute.xlu0 %787 }
 0x29a   : > { %v786_v44 = vpop.permute.xlu1 %785  ;;  %1152 = vmatprep.subr.bf16.mxu1 %v778_v22 }
 0x29b   : > { %v793_v45 = vsel %vm340_vm1, %v786_v44, %v788_v43 }
 0x29d   : > { %1153 = vmatpush3.bf16.msra.mxu1 %v778_v22  ;;  %v792_v46 = vpop.permute.xlu0 %791 }
 0x29e   : > { %v790_v47 = vpop.permute.xlu1 %789  ;;  %1154 = vmatprep.subr.bf16.mxu1 %v793_v45 }
 0x29f   : > { %v794_v48 = vsel %vm340_vm1, %v790_v47, %v792_v46 }
 0x2a1   : > { %1155 = vmatpush3.bf16.msra.mxu1 %v793_v45  ;;  %v800_v49 = vpop.permute.xlu0 %799 }
 0x2a2   : > { %v798_v50 = vpop.permute.xlu1 %797  ;;  %1156 = vmatprep.subr.bf16.mxu1 %v794_v48 }
 0x2a3   : > { %v805_v51 = vsel %vm347_vm2, %v798_v50, %v800_v49 }
 0x2a5   : > { %1157 = vmatpush3.bf16.msra.mxu1 %v794_v48  ;;  %v804_v52 = vpop.permute.xlu0 %803 }
 0x2a6   : > { %v802_v53 = vpop.permute.xlu1 %801  ;;  %1158 = vmatprep.subr.bf16.mxu1 %v805_v51 }
 0x2a7   : > { %v806_v58 = vsel %vm347_vm2, %v802_v53, %v804_v52 }
 0x2a9   : > { %1159 = vmatpush3.bf16.msra.mxu1 %v805_v51  ;;  %v873_v59 = vpop.permute.xlu0 %872 }
 0x2aa   : > { %v871_v60 = vpop.permute.xlu1 %870  ;;  %1160 = vmatprep.subr.bf16.mxu1 %v806_v58 }
 0x2ab   : > { %v874_v61 = vsel %vm347_vm2, %v871_v60, %v873_v59 }
 0x2ac   : > { %1166 = vmatprep.subr.bf16.mxu0 %v874_v61 }
 0x2ad   : > { %1167 = vmatpush3.bf16.msra.mxu0 %v874_v61  ;;  %1161 = vmatpush3.bf16.msra.mxu1 %v806_v58 }
 0x2b0   : > { %1169 = vmatmul.mubr.msk.bf16.vlgmr.msra.gmra.mrb[12].mxu0 %vm621_vm3, %v1545_v31  ;;  %1163 = vmatmul.mubr.msk.bf16.vlgmr.msra.gmra.mrb[4].mxu1 %vm517_vm6, %v1233_v42 }
 0x2ba   : > { %v495_v63 = vpop.permute.xlu0 %494 }
 0x2bb   : > { %v490_v62 = vpop.permute.xlu1 %489 }
 0x2be   : > { %v505_v1 = vpop.permute.xlu0 %504 }
 0x2bf   : > { %v500_v0 = vpop.permute.xlu1 %499 }
 0x2c2   : > { %v591_v3 = vpop.permute.xlu0 %590 }
 0x2c3   : > { %v586_v2 = vpop.permute.xlu1 %585  ;;  %v666_v22 = vadd.f32 %v1563_v57, %v591_v3 }
 0x2c4   : > { %v663_v16 = vadd.f32 %v1559_v55, %v586_v2 }
 0x2c6   : > { %v601_v8 = vpop.permute.xlu0 %600 }
 0x2c7   : > { %v596_v4 = vpop.permute.xlu1 %595  ;;  %v674_v19 = vadd.f32 %v1561_v56, %v601_v8 }
 0x2c8   : > { %v671_v13 = vadd.f32 %v1557_v54, %v596_v4 }
 0x36b   : > { %v1132_v5 = vpop.f32.mrb[0].mxu1 }
 0x36c   : > { %v567_v6 = vadd.f32 %v1132_v5, %v500_v0  ;;  %v558_v7 = vpop.f32.mrb[1].mxu1 }
 0x36d   : > { %v559_v9 = vadd.f32 %v558_v7, %v490_v62  ;;  %v1133_v10 = vpop.f32.mrb[2].mxu1 }
 0x36e   : > { %v575_v14 = vmax.f32 %v567_v6, 0.0  ;;  %v570_v31 = vadd.f32 %v1133_v10, %v505_v1  ;;  %v561_v15 = vpop.f32.mrb[3].mxu1 }
 0x36f   : > { %v573_v17 = vmax.f32 %v559_v9, 0.0  ;;  %v562_v18 = vadd.f32 %v561_v15, %v495_v63 }
 0x370   : > { %v679_v20 = vadd.f32 %v671_v13, %v575_v14  ;;  %v576_v21 = vmax.f32 %v570_v31, 0.0 }
 0x371   : > { %v677_v23 = vadd.f32 %v663_v16, %v573_v17  ;;  %v574_v24 = vmax.f32 %v562_v18, 0.0 }
 0x372   : > { %v683_v25 = vmax.f32 %v679_v20, 0.0  ;;  %v680_v11 = vadd.f32 %v674_v19, %v576_v21 }
 0x373   : > { %v681_v12 = vmax.f32 %v677_v23, 0.0  ;;  %v678_v54 = vadd.f32 %v666_v22, %v574_v24 }
 0x374   : > { %687 = vst [vmem:[%s1648_s21 + $0x10] sm:$0xff] %v683_v25  ;;  %v684_v55 = vmax.f32 %v680_v11, 0.0 }
 0x375   : > { %685 = vst [vmem:[%s1648_s21] sm:$0xff] %v681_v12  ;;  %v682_v56 = vmax.f32 %v678_v54, 0.0 }
 0x376   : > { %688 = vst [vmem:[%s1648_s21 + $0x18] sm:$0xff] %v684_v55 }
 0x377   : > { %686 = vst [vmem:[%s1648_s21 + $0x8] sm:$0xff] %v682_v56 }
 0x383   : > { %v1170_v57 = vpop.f32.mrb[12].mxu0  ;;  %v1164_v26 = vpop.f32.mrb[4].mxu1 }
 0x384   : > { %v852_v27 = vadd.f32 %v1164_v26, %v500_v0  ;;  %v910_v28 = vpop.f32.mrb[13].mxu0  ;;  %v843_v29 = vpop.f32.mrb[5].mxu1  ;;  %v919_v34 = vadd.f32 %v1170_v57, %v596_v4 }
 0x385   : > { %v844_v30 = vadd.f32 %v843_v29, %v490_v62  ;;  %v1171_v32 = vpop.f32.mrb[14].mxu0  ;;  %v1165_v33 = vpop.f32.mrb[6].mxu1  ;;  %v911_v39 = vadd.f32 %v910_v28, %v586_v2 }
 0x386   : > { %v860_v35 = vmax.f32 %v852_v27, 0.0  ;;  %v855_v36 = vadd.f32 %v1165_v33, %v505_v1  ;;  %v913_v37 = vpop.f32.mrb[15].mxu0  ;;  %v846_v38 = vpop.f32.mrb[7].mxu1  ;;  %v922_v43 = vadd.f32 %v1171_v32, %v601_v8 }
 0x387   : > { %v858_v40 = vmax.f32 %v844_v30, 0.0  ;;  %v847_v41 = vadd.f32 %v846_v38, %v495_v63  ;;  %v914_v46 = vadd.f32 %v913_v37, %v591_v3 }
 0x388   : > { %v927_v42 = vadd.f32 %v919_v34, %v860_v35  ;;  %v861_v44 = vmax.f32 %v855_v36, 0.0 }
 0x389   : > { %v925_v45 = vadd.f32 %v911_v39, %v858_v40  ;;  %v859_v47 = vmax.f32 %v847_v41, 0.0 }
 0x38a   : > { %v931_v48 = vmax.f32 %v927_v42, 0.0  ;;  %v928_v49 = vadd.f32 %v922_v43, %v861_v44 }
 0x38b   : > { %v929_v50 = vmax.f32 %v925_v45, 0.0  ;;  %v926_v51 = vadd.f32 %v914_v46, %v859_v47 }
 0x38c   : > { %1064 = vst [vmem:[%s1648_s21 + $0x30] sm:$0xff] %v931_v48  ;;  %v932_v52 = vmax.f32 %v928_v49, 0.0 }
 0x38d   : > { %1062 = vst [vmem:[%s1648_s21 + $0x20] sm:$0xff] %v929_v50  ;;  %v930_v53 = vmax.f32 %v926_v51, 0.0 }
 0x38e   : > { %1065 = vst [vmem:[%s1648_s21 + $0x38] sm:$0xff] %v932_v52 }
 0x38f   : > { %1063 = vst [vmem:[%s1648_s21 + $0x28] sm:$0xff] %v930_v53 }
 0x390   : > { %1277 = shalt.err (!%p1274_p2)
}
 0x391   : > { %s1278_s22 = scalar_lea.hbm %s1660_s11, 1024  ;;  %s1282_s21 = scalar_lea.hbm %s1716_s7, 2048 }
 0x392   : > { %p1279_p4 = scmp.ne.s32.totalorder %s1660_s11, %s1278_s22  ;;  %p1283_p9 = scmp.lt.u32.totalorder %s1660_s11, %s1716_s7 }
 0x393   : > { %p1284_p1 = scmp.lt.u32.totalorder %s1282_s21, %s1278_s22  ;;  %p1286_p6 = scmp.lt.u32.totalorder %s1278_s22, %s1660_s11 }
 0x394   : > { %p1280_p5 = pnand %p1279_p4, %p1723_p11 }
 0x395   : > { %p1285_p3 = por %p1284_p1, %p1283_p9 }
 0x396   : > { %p1281_p7 = pneg %p1280_p5 }
 0x397   : > { %p1287_p12 = por %p1286_p6, %p1285_p3 }
 0x399   : > { %p1288_p13 = pnand %p1287_p12, %p1281_p7 }
 0x39b   : > { %1291 = shalt.err (!%p1288_p13)
}
 0x39c   : > { %s1340_s8 = smov 128   ;;  %s1341_s18 = smov 8  }
 0x39d   : > { %1174 = dma.vmem_to_hbm [thread:$0]  (%p1723_p11), %s1662_s17, 1024, %s1660_s11, %s939_s28, %s1340_s8, %s1340_s8, %s1341_s18  }
 0x39e PF: > { %s968_s15 = sand.u32 1, %s1318_s24   ;;  %p1724_p8 = scmp.ne.s32.totalorder %s1721_s14, 0 }
 0x39f   : > { %p1725_p10 = scmp.ge.s32.totalorder %s1330_s27, 2  ;;  %s969_s23 = scalar_lea.sflag [#allocation5], %s968_s15 }
 0x3a1   : > { %p1181_p0 = pnand %p1725_p10, %p1724_p8 }
 0x3a3   : > { %1313 = dma.done.wait (!%p1181_p0), %s969_s23, 1024  }
 0x3a4   : > { %1315 = vsyncadd (!%p1181_p0), %s969_s23, 4294966272  ;;  %p20_p2 = scmp.ge.s32.totalorder %s1407_s30, 4   ;;  %s1726_s24 = smov %s1322_s25 }
 0x3a5   : > { %s1727_s25 = smov %s1326_s26  ;;  %s1728_s26 = smov %s1419_s10 }
 0x3a6   : > { %s1729_s27 = smov %s1407_s30  ;;  %22 = sbr.rel (!%p20_p2) target bundleno = 5 (0x5), region = 95 }
 0x3ad   :  { %974 = vsyncpa [#allocation4], 1 }
 0x3ae   :  { %976 = vsyncpa [#allocation4 + $0x1], 1 }
 0x3af   :  { %977 = vsyncpa [#allocation5], 1 }
 0x3b0   :  { %979 = vsyncpa [#allocation5 + $0x1], 1 }

</bundles_post_ra>
